<compile_context>
chip_gen: v7x
topology: tpu7x:2x2x1
jax: 0.10.0
libtpu: 0.0.40
codegen_flags: <defaults>
</compile_context>

<pallas_src>
import functools

import jax
import jax.numpy as jnp
from jax.experimental import pallas as pl
from jax.experimental.pallas import tpu as pltpu

LN_EPS = 1e-5   # nn.LayerNorm default
BN_EPS = 2e-5   # feature-head BatchNorm1d eps


def _vmem_limit_bytes():
    """Budget scoped VMEM explicitly (clamps to ~48 MiB on v7x, ~100 MiB on v5e/v6e)."""
    try:
        cap = int(pltpu.get_tpu_info().vmem_capacity_bytes)
    except Exception:
        cap = 128 * 1024 * 1024
    return max(32 * 1024 * 1024, min(cap - 16 * 1024 * 1024, 100 * 1024 * 1024))


_VMEM_LIMIT = _vmem_limit_bytes()
_PARALLEL_PARAMS = pltpu.CompilerParams(
    dimension_semantics=("parallel",), vmem_limit_bytes=_VMEM_LIMIT)
_REDUCE_PARAMS = pltpu.CompilerParams(
    dimension_semantics=("arbitrary",), vmem_limit_bytes=_VMEM_LIMIT)
_BLOCKS_PARAMS = pltpu.CompilerParams(
    dimension_semantics=("parallel", "arbitrary"), vmem_limit_bytes=_VMEM_LIMIT)


# ----------------------------------------------------------------------------- helpers
def _layernorm(x, w, b):
    # PyTorch LayerNorm: biased variance, eps inside the sqrt.  Keep f32.
    mu = jnp.mean(x, axis=-1, keepdims=True)
    var = jnp.mean((x - mu) ** 2, axis=-1, keepdims=True)
    return (x - mu) * jax.lax.rsqrt(var + LN_EPS) * w + b


def _full_spec(shape):
    """Whole-array block whose index_map ignores every grid axis."""
    nd = len(shape)
    return pl.BlockSpec(shape, lambda *_, _nd=nd: (0,) * _nd)


# ----------------------------------------------------------------------------- kernels
def patch_embed_kernel(p_ref, w_ref, b_ref, pos_ref, o_ref):
    """p: (1, P, K) bf16 patches, w: (K, D) bf16, b/pos: f32 -> o: (1, P, D) bf16."""
    y = jnp.dot(p_ref[0], w_ref[...], preferred_element_type=jnp.float32)
    o_ref[0] = (y + b_ref[...] + pos_ref[...]).astype(o_ref.dtype)


def fused_blocks_kernel(depth, num_heads,
                        x_ref, ln1w_ref, ln1b_ref, wqkv_ref, wproj_ref, bproj_ref,
                        ln2w_ref, ln2b_ref, w1_ref, b1_ref, w2_ref, b2_ref,
                        fnw_ref, fnb_ref, o_ref, res_ref):
    """All `depth` transformer Blocks for one image, weight-streaming over the
    layer grid axis.  The residual stream stays resident in `res_ref` (f32 VMEM)
    across the whole depth stretch; the model-level final LayerNorm is fused
    into the last layer and the result stored once as bf16."""
    l = pl.program_id(1)

    @pl.when(l == 0)
    def _():
        res_ref[...] = x_ref[0].astype(jnp.float32)

    x = res_ref[...]                                   # (N, D) f32
    n_tok, dim = x.shape
    head_dim = dim // num_heads
    scale = head_dim ** (-0.5)

    # ---- attention branch (pre-LN, residual) -------------------------------
    h = _layernorm(x, ln1w_ref[0], ln1b_ref[0])
    qkv = jnp.dot(h.astype(jnp.bfloat16), wqkv_ref[0],
                  preferred_element_type=jnp.float32)              # (N, 3D)
    q = qkv[:, :dim].reshape(n_tok, num_heads, head_dim).astype(jnp.bfloat16)
    k = qkv[:, dim:2 * dim].reshape(n_tok, num_heads, head_dim).astype(jnp.bfloat16)
    v = qkv[:, 2 * dim:].reshape(n_tok, num_heads, head_dim).astype(jnp.bfloat16)

    # batched over heads; no explicit split/merge transposes in the body
    att = jnp.einsum('qhd,khd->hqk', q, k,
                     preferred_element_type=jnp.float32) * scale   # (H, N, N) f32
    att = att - jnp.max(att, axis=-1, keepdims=True)
    p = jnp.exp(att)
    p = p * pl.reciprocal(jnp.sum(p, axis=-1, keepdims=True), approx=True)

    ctx = jnp.einsum('hqk,khd->qhd', p.astype(jnp.bfloat16), v,
                     preferred_element_type=jnp.float32)           # (N, H, hd)
    ctx = ctx.reshape(n_tok, dim)
    attn_out = jnp.dot(ctx.astype(jnp.bfloat16), wproj_ref[0],
                       preferred_element_type=jnp.float32) + bproj_ref[0]
    x = x + attn_out

    # ---- MLP branch (ReLU6, pre-LN, residual) -------------------------------
    h = _layernorm(x, ln2w_ref[0], ln2b_ref[0])
    h = jnp.dot(h.astype(jnp.bfloat16), w1_ref[0],
                preferred_element_type=jnp.float32) + b1_ref[0]
    h = jnp.clip(h, 0.0, 6.0)                                      # ReLU6
    h = jnp.dot(h.astype(jnp.bfloat16), w2_ref[0],
                preferred_element_type=jnp.float32) + b2_ref[0]
    x = x + h

    res_ref[...] = x

    @pl.when(l == depth - 1)
    def _():
        y = _layernorm(x, fnw_ref[...], fnb_ref[...])              # fused model norm
        o_ref[0] = y.astype(o_ref.dtype)


def head_kernel(x_ref, w1_ref, s1_ref, t1_ref, w2_ref, s2_ref, t2_ref,
                o_ref, acc_ref):
    """feature head: Linear(no bias) -> BN(eval) -> Linear(no bias) -> BN(eval).

    Grid axis 0 tiles the huge F = P*D reduction dimension of the first linear
    layer; acc_ref is the resident f32 accumulator.  Output is written only on
    the final grid step (constant output index_map => single final writeback)."""
    f = pl.program_id(0)

    @pl.when(f == 0)
    def _():
        acc_ref[...] = jnp.zeros_like(acc_ref)

    acc_ref[...] += jnp.dot(x_ref[...], w1_ref[...],
                            preferred_element_type=jnp.float32)

    @pl.when(f == pl.num_programs(0) - 1)
    def _():
        h = acc_ref[...] * s1_ref[...] + t1_ref[...]               # BN1 (eval)
        h = jnp.dot(h.astype(jnp.bfloat16), w2_ref[...],
                    preferred_element_type=jnp.float32)
        o_ref[...] = h * s2_ref[...] + t2_ref[...]                 # BN2 (eval)


# ----------------------------------------------------------------------------- wrappers
def run_patch_embed(patches, w, b, pos):
    B, P, K = patches.shape
    D = w.shape[1]
    return pl.pallas_call(
        patch_embed_kernel,
        out_shape=jax.ShapeDtypeStruct((B, P, D), jnp.bfloat16),
        grid=(B,),
        in_specs=[pl.BlockSpec((1, P, K), lambda i: (i, 0, 0)),
                  _full_spec((K, D)), _full_spec((1, D)), _full_spec((P, D))],
        out_specs=pl.BlockSpec((1, P, D), lambda i: (i, 0, 0)),
        compiler_params=_PARALLEL_PARAMS,
    )(patches, w, b, pos)


def run_blocks(x, params, num_heads):
    """Single pallas_call over grid (B, depth): weights streamed per layer,
    residual stream resident in VMEM across the depth axis."""
    B, N, D = x.shape
    depth = params["blk_wqkv"].shape[0]
    Hm = params["blk_w1"].shape[2]

    def layer_spec(a):  # select layer l from a (depth, r, c) stacked param
        return pl.BlockSpec((1,) + a.shape[1:], lambda b, l: (l, 0, 0))

    kern = functools.partial(fused_blocks_kernel, depth, num_heads)
    return pl.pallas_call(
        kern,
        out_shape=jax.ShapeDtypeStruct((B, N, D), jnp.bfloat16),
        grid=(B, depth),
        in_specs=[pl.BlockSpec((1, N, D), lambda b, l: (b, 0, 0)),
                  layer_spec(params["blk_ln1_w"]), layer_spec(params["blk_ln1_b"]),
                  layer_spec(params["blk_wqkv"]), layer_spec(params["blk_wproj"]),
                  layer_spec(params["blk_bproj"]),
                  layer_spec(params["blk_ln2_w"]), layer_spec(params["blk_ln2_b"]),
                  layer_spec(params["blk_w1"]), layer_spec(params["blk_b1"]),
                  layer_spec(params["blk_w2"]), layer_spec(params["blk_b2"]),
                  _full_spec((1, D)), _full_spec((1, D))],
        out_specs=pl.BlockSpec((1, N, D), lambda b, l: (b, 0, 0)),
        scratch_shapes=[pltpu.VMEM((N, D), jnp.float32)],
        compiler_params=_BLOCKS_PARAMS,
    )(x, params["blk_ln1_w"], params["blk_ln1_b"], params["blk_wqkv"],
      params["blk_wproj"], params["blk_bproj"], params["blk_ln2_w"],
      params["blk_ln2_b"], params["blk_w1"], params["blk_b1"],
      params["blk_w2"], params["blk_b2"], params["norm_w"], params["norm_b"])


def _pick_f_tile(F, d_out, target_bytes=8 << 20):
    """Largest multiple of 128 dividing F whose bf16 weight tile ~= target_bytes."""
    if F % 128 != 0:
        return F
    cand = min(F, max(128, (target_bytes // (2 * d_out)) // 128 * 128))
    while cand > 128 and F % cand != 0:
        cand -= 128
    return cand if (cand >= 128 and F % cand == 0) else F


def run_head(x_flat, w1, s1, t1, w2, s2, t2):
    B, F = x_flat.shape
    D = w1.shape[1]
    C = w2.shape[1]
    ft = _pick_f_tile(F, D)
    nf = F // ft
    # TODO(synk): for production-size heads, quantize w1 to int8 (v5e/v6e) /
    # fp8 (v7x) with per-tile scales to halve the HBM-bound weight stream.
    return pl.pallas_call(
        head_kernel,
        out_shape=jax.ShapeDtypeStruct((B, C), jnp.float32),
        grid=(nf,),
        in_specs=[pl.BlockSpec((B, ft), lambda f: (0, f)),
                  pl.BlockSpec((ft, D), lambda f: (f, 0)),
                  _full_spec((1, D)), _full_spec((1, D)),
                  _full_spec((D, C)), _full_spec((1, C)), _full_spec((1, C))],
        out_specs=pl.BlockSpec((B, C), lambda f: (0, 0)),
        scratch_shapes=[pltpu.VMEM((B, D), jnp.float32)],
        compiler_params=_REDUCE_PARAMS,
    )(x_flat, w1, s1, t1, w2, s2, t2)


# ----------------------------------------------------------------------------- model
def init_params(key, cfg):
    D = cfg["embed_dim"]
    C = cfg["in_channels"]
    ph = cfg["patch_size"]
    P = (cfg["img_size"] // ph) ** 2
    Hm = int(D * cfg["mlp_ratio"])
    NC = cfg["num_classes"]
    K = C * ph * ph
    L = cfg["depth"]

    keys = iter(jax.random.split(key, 64))

    def norm(shape, dtype=jnp.bfloat16):
        return (0.02 * jax.random.normal(next(keys), shape, jnp.float32)).astype(dtype)

    params = {
        # patch embed: conv weight flattened to (K, D), stored bf16
        "patch_w": norm((K, D)),
        "patch_b": jnp.zeros((1, D), jnp.float32),
        "pos_embed": norm((P, D), jnp.float32),
        # transformer blocks: weights stacked along a leading depth axis
        "blk_ln1_w": jnp.ones((L, 1, D), jnp.float32),
        "blk_ln1_b": jnp.zeros((L, 1, D), jnp.float32),
        "blk_wqkv": norm((L, D, 3 * D)),        # qkv fused; qkv_bias=False (default)
        "blk_wproj": norm((L, D, D)),
        "blk_bproj": jnp.zeros((L, 1, D), jnp.float32),
        "blk_ln2_w": jnp.ones((L, 1, D), jnp.float32),
        "blk_ln2_b": jnp.zeros((L, 1, D), jnp.float32),
        "blk_w1": norm((L, D, Hm)),
        "blk_b1": jnp.zeros((L, 1, Hm), jnp.float32),
        "blk_w2": norm((L, Hm, D)),
        "blk_b2": jnp.zeros((L, 1, D), jnp.float32),
        # final model-level LayerNorm
        "norm_w": jnp.ones((1, D), jnp.float32),
        "norm_b": jnp.zeros((1, D), jnp.float32),
        # feature head (bf16 weights, (in, out) layout)
        "feat_w1": norm((P * D, D)),
        "feat_w2": norm((D, NC)),
    }

    # BatchNorm1d (eval): running_mean=0, running_var=1, gamma=1, beta=0
    bn_scale_val = 1.0 / (1.0 + BN_EPS) ** 0.5
    params["bn1_scale"] = jnp.full((1, D), bn_scale_val, jnp.float32)
    params["bn1_shift"] = jnp.zeros((1, D), jnp.float32)
    params["bn2_scale"] = jnp.full((1, NC), bn_scale_val, jnp.float32)
    params["bn2_shift"] = jnp.zeros((1, NC), jnp.float32)
    return params


def vit_forward(x_nchw, params, cfg):
    B, C, H, W = x_nchw.shape
    ph = cfg["patch_size"]
    Hn, Wn = H // ph, W // ph

    # patch extraction (glue): (B,C,H,W) -> (B, P, C*ph*ph), matching Conv2d
    # with kernel=stride=patch over NCHW followed by flatten(2).transpose(1,2).
    patches = (x_nchw.reshape(B, C, Hn, ph, Wn, ph)
               .transpose(0, 2, 4, 1, 3, 5)
               .reshape(B, Hn * Wn, C * ph * ph)).astype(jnp.bfloat16)

    x = run_patch_embed(patches, params["patch_w"], params["patch_b"],
                        params["pos_embed"])               # + pos_embed fused in

    # all transformer blocks + final LayerNorm in ONE weight-streaming call
    x = run_blocks(x, params, cfg["num_heads"])

    x_flat = x.reshape(B, -1)                              # (B, P*D) bf16
    out = run_head(x_flat, params["feat_w1"],
                   params["bn1_scale"], params["bn1_shift"],
                   params["feat_w2"], params["bn2_scale"], params["bn2_shift"])
    return out


# TODO(synk): training-time paths (dropout, drop_path, random_masking + mask_token
# re-insertion) are not executed in eval mode and are intentionally omitted.
# TODO(synk): for very large batches, tile 2-4 images per block grid step and
# flatten to M = Bt*N for the qkv/proj/MLP matmuls (review item 8); Bt=1 here.
# TODO(synk): toy config below has lane widths < 128 (D=32, NC=16); production
# configs should keep D / 3D / 4D / num_classes as multiples of 128.

if __name__ == "__main__":
    cfg = dict(img_size=16, patch_size=8, in_channels=3, num_classes=16,
               embed_dim=32, depth=2, num_heads=4, mlp_ratio=4.0)

    key = jax.random.PRNGKey(0)
    k_x, k_p = jax.random.split(key)
    x = jax.random.normal(k_x, (2, cfg["in_channels"], cfg["img_size"], cfg["img_size"]),
                          dtype=jnp.float32)
    params = init_params(k_p, cfg)

    out = vit_forward(x, params, cfg)
    out = jax.block_until_ready(out)
    assert out.shape == (2, cfg["num_classes"])
    assert jnp.all(jnp.isfinite(out))
    print("KERNEL_OK")
</pallas_src>

<mosaic_0001>
module attributes {stable_mosaic.version = 11 : i64} {
  func.func @patch_embed_kernel(%arg0: i32, %arg1: memref<1x4x192xbf16, #tpu.memory_space<vmem>>, %arg2: memref<192x32xbf16, #tpu.memory_space<vmem>>, %arg3: memref<1x32xf32, #tpu.memory_space<vmem>>, %arg4: memref<4x32xf32, #tpu.memory_space<vmem>>, %arg5: memref<1x4x32xbf16, #tpu.memory_space<vmem>>) attributes {dimension_semantics = [#tpu.dimension_semantics<parallel>], iteration_bounds = array<i64: 2>, scalar_prefetch = 0 : i64, scratch_operands = 0 : i64, tpu.core_type = #tpu.core_type<tc>, window_params = [{transform_indices = @transform_0, window_bounds = array<i64: 1, 4, 192>}, {pipeline_mode = #tpu.pipeline_mode<synchronous>, transform_indices = @transform_1, window_bounds = array<i64: 192, 32>}, {pipeline_mode = #tpu.pipeline_mode<synchronous>, transform_indices = @transform_2, window_bounds = array<i64: 1, 32>}, {pipeline_mode = #tpu.pipeline_mode<synchronous>, transform_indices = @transform_3, window_bounds = array<i64: 4, 32>}, {transform_indices = @transform_4, window_bounds = array<i64: 1, 4, 32>}]} {
    %c0 = arith.constant 0 : index
    %c0_0 = arith.constant 0 : index
    %c0_1 = arith.constant 0 : index
    %0 = vector.load %arg1[%c0, %c0_0, %c0_1] : memref<1x4x192xbf16, #tpu.memory_space<vmem>>, vector<1x4x192xbf16>
    %1 = vector.shape_cast %0 : vector<1x4x192xbf16> to vector<4x192xbf16>
    %c0_2 = arith.constant 0 : index
    %c0_3 = arith.constant 0 : index
    %2 = vector.load %arg2[%c0_2, %c0_3] : memref<192x32xbf16, #tpu.memory_space<vmem>>, vector<192x32xbf16>
    %cst = arith.constant dense<0.000000e+00> : vector<4x32xf32>
    %3 = tpu.matmul %1, %2, %cst {dimension_numbers = #tpu.dot_dimension_numbers<[1], [0], [0], [1], [0, 0, 1, 1], [], []>} : vector<4x192xbf16>, vector<192x32xbf16>, vector<4x32xf32> -> vector<4x32xf32>
    %c0_4 = arith.constant 0 : index
    %c0_5 = arith.constant 0 : index
    %4 = vector.load %arg3[%c0_4, %c0_5] : memref<1x32xf32, #tpu.memory_space<vmem>>, vector<1x32xf32>
    %5 = vector.broadcast %4 : vector<1x32xf32> to vector<4x32xf32>
    %6 = arith.addf %3, %5 : vector<4x32xf32>
    %c0_6 = arith.constant 0 : index
    %c0_7 = arith.constant 0 : index
    %7 = vector.load %arg4[%c0_6, %c0_7] : memref<4x32xf32, #tpu.memory_space<vmem>>, vector<4x32xf32>
    %8 = arith.addf %6, %7 : vector<4x32xf32>
    %9 = arith.truncf %8 : vector<4x32xf32> to vector<4x32xbf16>
    %c0_8 = arith.constant 0 : index
    %c0_9 = arith.constant 0 : index
    %c0_10 = arith.constant 0 : index
    %10 = vector.load %arg5[%c0_8, %c0_9, %c0_10] : memref<1x4x32xbf16, #tpu.memory_space<vmem>>, vector<1x4x32xbf16>
    %11 = vector.shape_cast %10 : vector<1x4x32xbf16> to vector<4x32xbf16>
    %12 = vector.shape_cast %9 : vector<4x32xbf16> to vector<1x4x32xbf16>
    tpu.vector_store %arg5[%c0_8, %c0_9, %c0_10], %12 {strides = array<i32>} : memref<1x4x32xbf16, #tpu.memory_space<vmem>>, vector<1x4x32xbf16>,
    return
  }
  func.func @transform_0(%arg0: i32) -> (i32, i32, i32) {
    %c0_i32 = arith.constant 0 : i32
    %c0_i32_0 = arith.constant 0 : i32
    %c0_i32_1 = arith.constant 0 : i32
    return %arg0, %c0_i32, %c0_i32_0 : i32, i32, i32
  }
  func.func @transform_1(%arg0: i32) -> (i32, i32) {
    %c0_i32 = arith.constant 0 : i32
    %c0_i32_0 = arith.constant 0 : i32
    %c0_i32_1 = arith.constant 0 : i32
    return %c0_i32, %c0_i32_0 : i32, i32
  }
  func.func @transform_2(%arg0: i32) -> (i32, i32) {
    %c0_i32 = arith.constant 0 : i32
    %c0_i32_0 = arith.constant 0 : i32
    %c0_i32_1 = arith.constant 0 : i32
    return %c0_i32, %c0_i32_0 : i32, i32
  }
  func.func @transform_3(%arg0: i32) -> (i32, i32) {
    %c0_i32 = arith.constant 0 : i32
    %c0_i32_0 = arith.constant 0 : i32
    %c0_i32_1 = arith.constant 0 : i32
    return %c0_i32, %c0_i32_0 : i32, i32
  }
  func.func @transform_4(%arg0: i32) -> (i32, i32, i32) {
    %c0_i32 = arith.constant 0 : i32
    %c0_i32_0 = arith.constant 0 : i32
    %c0_i32_1 = arith.constant 0 : i32
    return %arg0, %c0_i32, %c0_i32_0 : i32, i32, i32
  }
}

</mosaic_0001>

<bundles_post_ra>
// kernel: tpu_custom_call.1
= control target key start
LH: loop header
LB: loop body
LE: loop exit
PB: predicated region body
PF: predicated region fallthrough
CT: control target
= control target key end

     0   :  { %9 = vsyncpa [#allocation3], 0  ;;  %s1137_s0 = inlined_call_operand.hbm [shape: bf16[2,4,192], index: 0, kind: input, shape index: {}]   ;;  %s1138_s1 = inlined_call_operand.hbm [shape: bf16[192,32], index: 1, kind: input, shape index: {}]   ;;  %s1139_s2 = inlined_call_operand.hbm [shape: f32[1,32], index: 2, kind: input, shape index: {}]   ;;  %s1140_s3 = inlined_call_operand.hbm [shape: f32[4,32], index: 3, kind: input, shape index: {}]   ;;  %s1141_s4 = inlined_call_operand.hbm [shape: bf16[2,4,32], index: 4, kind: output, shape index: {}]  }
   0x1   :  { %11 = vsyncpa [#allocation3 + $0x1], 0 }
   0x2   :  { %12 = vsyncpa [#allocation6], 0 }
   0x3   :  { %13 = vsyncpa [#allocation9], 0 }
   0x4   :  { %14 = vsyncpa [#allocation4], 0 }
   0x5   :  { %16 = vsyncpa [#allocation4 + $0x1], 0  ;;  %s881_s15 = smov 0   ;;  %s883_s16 = smov 0  }
   0x6   :  { %s885_s17 = smov 0   ;;  %s887_s18 = smov 0  }
   0x7 LB: > { %s902_s19 = sadd.s32 4294967295, %s846_s18   ;;  %s531_s20 = sadd.s32 4294967294, %s846_s18   ;;  %s846_s18 = sphi %s887_s18, %s1164_s18   ;;  %s842_s17 = sphi %s885_s17, %s1163_s17   ;;  %s838_s16 = sphi %s883_s16, %s1162_s16   ;;  %s834_s15 = sphi %s881_s15, %s1161_s15  }
   0x8   : > { %p42_p0 = scmp.ne.s32.totalorder %s838_s16, %s834_s15  ;;  %p1142_p1 = scmp.eq.s32.totalorder %s902_s19, 0 }
   0x9   : > { %p135_p3 = scmp.eq.s32.totalorder %s531_s20, 1  ;;  %p532_p5 = scmp.ge.s32.totalorder %s846_s18, 1 }
   0xa   : > { %p911_p4 = por %p1142_p1, %p42_p0  ;;  %p142_p7 = scmp.lt.s32.totalorder %s846_s18, 3 }
   0xb   : > { %p916_p6 = por %p135_p3, %p42_p0  ;;  %s848_s24 = smov [#allocation5]  }
   0xc   : > { %s1145_s21 = scalar_select %p911_p4, 1, 0 }
   0xd   : > { %s1146_s22 = scalar_select %p916_p6, 1, 0 }
   0xe   : > { %p921_p8 = pnand %p532_p5, %p142_p7  ;;  %s154_s25 = sshll.u32 %s848_s24, 4  ;;  %s925_s25 = int_to_ptr.vmem [resolvable:$true] %s154_s25 }
   0xf   : > { %s849_s27 = smov [#allocation7]   ;;  %s850_s29 = smov [#allocation8]  }
  0x10   : > { %s1147_s23 = scalar_select %p921_p8, 1, 0 }
  0x11   : > { %p582_p9 = pneg %p921_p8  ;;  %s168_s28 = sshll.u32 %s849_s27, 4  ;;  %s936_s28 = int_to_ptr.vmem [resolvable:$true] %s168_s28 }
  0x12   : > { %s938_s30 = sshll.u32 %s850_s29, 4  ;;  %s658_s7 = scalar_lea.hbm %s1138_s1, 1536  ;;  %s180_s30 = int_to_ptr.vmem [resolvable:$true] %s938_s30 }
  0x13   : > { %p932_p11 = pnand %p582_p9, %p1142_p1  ;;  %p659_p12 = scmp.ne.s32.totalorder %s1138_s1, %s658_s7 }
  0x14   : > { %p665_p5 = scmp.lt.u32.totalorder %s658_s7, %s1138_s1 }
  0x15   : > { %p948_p13 = pneg %p932_p11 }
  0x17   : > { %p661_p0 = pnand %p948_p13, %p659_p12 }
  0x19   : > { %p662_p3 = pneg %p661_p0 }
  0x1b   : > { %p667_p7 = pnand %p665_p5, %p662_p3 }
  0x1d   : > { %670 = shalt.err (!%p667_p7)
}
  0x1e   : > { %s671_s13 = scalar_lea.vmem %s925_s25, 1536  ;;  %p679_p2 = scmp.lt.s32.totalorder %s925_s25, %s925_s25 }
  0x1f   : > { %p672_p9 = scmp.ne.s32.totalorder %s925_s25, %s671_s13  ;;  %p680_p6 = scmp.lt.s32.totalorder %s671_s13, %s671_s13 }
  0x21   : > { %p674_p10 = pnand %p672_p9, %p948_p13  ;;  %p681_p12 = por %p680_p6, %p679_p2 }
  0x23   : > { %p675_p1 = pneg %p674_p10 }
  0x25   : > { %p682_p0 = pnand %p681_p12, %p675_p1 }
  0x27   : > { %685 = shalt.err (!%p682_p0)
}
  0x28   : > { %s851_s14 = smov 64   ;;  %s852_s20 = smov 4  }
  0x29   : > { %585 = dma.hbm_to_vmem [thread:$0]  (!%p932_p11), %s1138_s1, 1536, %s925_s25, [#allocation6], %s851_s14, %s851_s14, %s852_s20  }
  0x2a   : > { %s686_s6 = scalar_lea.hbm %s1139_s2, 16 }
  0x2b   : > { %p687_p2 = scmp.ne.s32.totalorder %s1139_s2, %s686_s6  ;;  %p693_p10 = scmp.lt.u32.totalorder %s686_s6, %s1139_s2 }
  0x2d   : > { %p689_p1 = pnand %p687_p2, %p948_p13 }
  0x2f   : > { %p690_p6 = pneg %p689_p1 }
  0x31   : > { %p695_p3 = pnand %p693_p10, %p690_p6 }
  0x33   : > { %698 = shalt.err (!%p695_p3)
}
  0x34   : > { %s699_s25 = scalar_lea.vmem %s936_s28, 16  ;;  %s706_s12 = scalar_lea.vmem %s936_s28, 32 }
  0x35   : > { %p700_p5 = scmp.ne.s32.totalorder %s936_s28, %s699_s25  ;;  %p707_p12 = scmp.lt.s32.totalorder %s936_s28, %s936_s28 }
  0x36   : > { %p708_p0 = scmp.lt.s32.totalorder %s706_s12, %s699_s25 }
  0x37   : > { %p702_p7 = pnand %p700_p5, %p948_p13 }
  0x38   : > { %p709_p2 = por %p708_p0, %p707_p12 }
  0x39   : > { %p703_p9 = pneg %p702_p7 }
  0x3b   : > { %p710_p1 = pnand %p709_p2, %p703_p9 }
  0x3d   : > { %713 = shalt.err (!%p710_p1)
}
  0x3e   : > { %588 = dma.hbm_to_vmem [thread:$0]  (!%p932_p11), %s1139_s2, 16, %s936_s28, [#allocation6]  }
  0x3f   : > { %s714_s27 = scalar_lea.hbm %s1140_s3, 64 }
  0x40   : > { %p715_p6 = scmp.ne.s32.totalorder %s1140_s3, %s714_s27  ;;  %p721_p5 = scmp.lt.u32.totalorder %s714_s27, %s1140_s3 }
  0x42   : > { %p717_p10 = pnand %p715_p6, %p948_p13 }
  0x44   : > { %p718_p3 = pneg %p717_p10 }
  0x46   : > { %p723_p7 = pnand %p721_p5, %p718_p3 }
  0x48   : > { %726 = shalt.err (!%p723_p7)
}
  0x49   : > { %s727_s8 = scalar_lea.vmem %s180_s30, 64  ;;  %p735_p2 = scmp.lt.s32.totalorder %s180_s30, %s180_s30 }
  0x4a   : > { %p728_p9 = scmp.ne.s32.totalorder %s180_s30, %s727_s8  ;;  %p736_p1 = scmp.lt.s32.totalorder %s727_s8, %s727_s8 }
  0x4c   : > { %p730_p12 = pnand %p728_p9, %p948_p13  ;;  %p737_p4 = por %p736_p1, %p735_p2 }
  0x4e   : > { %p731_p0 = pneg %p730_p12 }
  0x50   : > { %p738_p8 = pnand %p737_p4, %p731_p0 }
  0x52   : > { %741 = shalt.err (!%p738_p8)
}
  0x53   : > { %591 = dma.hbm_to_vmem [thread:$0]  (!%p932_p11), %s1140_s3, 64, %s180_s30, [#allocation9]  }
  0x54   : > { %s1013_s10 = sadd.s32 1, %s846_s18   ;;  %s29_s26 = sadd.s32 1, %s842_s17 }
  0x55   : > { %s26_s11 = ssub.s32 %s846_s18, %s1013_s10  ;;  %p36_p8 = scmp.ne.s32.totalorder %s842_s17, %s838_s16 }
  0x56   : > { %p27_p4 = scmp.eq.s32.totalorder %s26_s11, 0  ;;  %p37_p13 = scmp.eq.s32.totalorder %s846_s18, 0 }
  0x57   : > { %p603_p6 = scmp.lt.s32.totalorder %s846_s18, 2  ;;  %p1150_p3 = scmp.eq.s32.totalorder %s902_s19, 1 }
  0x58   : > { %s1023_s25 = scalar_select %p27_p4, %s842_s17, %s29_s26  }
  0x59   : > { %p38_p10 = por %p37_p13, %p36_p8  ;;  %p1027_p5 = por %p1150_p3, %p36_p8 }
  0x5a   : > { %s190_s13 = sand.u32 1, %s842_s17   ;;  %s565_s14 = sshll.u32 %s846_s18, 6 }
  0x5b   : > { %s537_s30 = sshll.u32 %s190_s13, 2  ;;  %s1036_s27 = scalar_lea.hbm %s1137_s0, %s565_s14 }
  0x5c   : > { %s194_s29 = scalar_lea.vmem [#allocation2], %s537_s30  ;;  %p1038_p11 = pnand %p603_p6, %p38_p10 }
  0x5d   : > { %s202_s5 = sshll.u32 %s194_s29, 4  ;;  %s191_s7 = scalar_lea.sflag [#allocation3], %s190_s13  ;;  %s1042_s5 = int_to_ptr.vmem [resolvable:$true] %s202_s5 }
  0x5e   : > { %s742_s8 = scalar_lea.hbm %s1036_s27, 64  ;;  %p744_p9 = pneg %p1038_p11 }
  0x5f   : > { %p743_p7 = scmp.ne.s32.totalorder %s1036_s27, %s742_s8  ;;  %s747_s11 = scalar_lea.hbm %s1137_s0, 128 }
  0x60   : > { %p748_p2 = scmp.lt.u32.totalorder %s1036_s27, %s1137_s0  ;;  %p749_p1 = scmp.lt.u32.totalorder %s747_s11, %s742_s8 }
  0x61   : > { %p745_p12 = pnand %p744_p9, %p743_p7  ;;  %p751_p8 = scmp.lt.u32.totalorder %s742_s8, %s1036_s27 }
  0x62   : > { %p750_p4 = por %p749_p1, %p748_p2 }
  0x63   : > { %p746_p0 = pneg %p745_p12 }
  0x64   : > { %p752_p13 = por %p751_p8, %p750_p4 }
  0x66   : > { %p753_p6 = pnand %p752_p13, %p746_p0 }
  0x68   : > { %756 = shalt.err (!%p753_p6)
}
  0x69   : > { %s757_s13 = scalar_lea.vmem %s1042_s5, 64  ;;  %s853_s30 = smov [#allocation2]  }
  0x6a   : > { %p758_p10 = scmp.ne.s32.totalorder %s1042_s5, %s757_s13  ;;  %s762_s20 = sshll.u32 %s853_s30, 4  ;;  %s763_s20 = int_to_ptr.vmem [resolvable:$false] %s762_s20 }
  0x6b   : > { %s764_s24 = scalar_lea.vmem %s763_s20, 128  ;;  %p765_p12 = scmp.lt.s32.totalorder %s1042_s5, %s763_s20 }
  0x6c   : > { %p760_p3 = pnand %p758_p10, %p744_p9  ;;  %p766_p2 = scmp.lt.s32.totalorder %s764_s24, %s757_s13 }
  0x6e   : > { %p761_p7 = pneg %p760_p3  ;;  %p767_p1 = por %p766_p2, %p765_p12 }
  0x70   : > { %p768_p4 = pnand %p767_p1, %p761_p7 }
  0x72   : > { %771 = shalt.err (!%p768_p4)
}
  0x73   : > { %595 = dma.hbm_to_vmem [thread:$0]  (!%p1038_p11), %s1036_s27, 64, %s1042_s5, %s191_s7  }
  0x74   : > { %p1153_p0 = scmp.ne.s32.totalorder %s1147_s23, 0 }
  0x75   : > { %s1072_s29 = sand.u32 (!%p1153_p0), 1, %s838_s16   ;;  %p1154_p9 = scmp.ne.s32.totalorder (!%p1153_p0), %s1145_s21, 0 }
  0x76   : > { %211 = sbr.rel (%p1153_p0) target bundleno = 413 (0x19d), region = 36  ;;  %s541_s8 = sshll.u32 (!%p1153_p0), %s1072_s29, 2 }
  0x77   : > { %s214_s28 = scalar_lea.sflag (!%p1153_p0), [#allocation3], %s1072_s29  ;;  %s217_s9 = scalar_lea.vmem (!%p1153_p0), [#allocation2], %s541_s8 }
  0x7d   : > { %817 = dma.done.wait (%p1154_p9), %s214_s28, 64  }
  0x7e   : > { %819 = vsyncadd (%p1154_p9), %s214_s28, 4294967232  ;;  %p1155_p8 = scmp.eq.s32.totalorder %s902_s19, 0 }
  0x80   : > { %821 = dma.done.wait (%p1155_p8), [#allocation6], 1552   ;;  %p1156_p11 = pmov %p1155_p8 }
  0x81   : > { %p1157_p13 = pmov %p1155_p8 }
  0x82   : > { %823 = vsyncadd (%p1156_p11), [#allocation6], 4294965744 }
  0x83   : > { %825 = dma.done.wait (%p1157_p13), [#allocation9], 64   ;;  %p1158_p6 = pmov %p1155_p8 }
  0x84   : > { %v854_v0 = vmov 0   ;;  %v646_v1 = vld [vmem:[#allocation5] sm:$0xff]   ;;  %v647_v2 = vld [vmem:[#allocation5 + $0x8] sm:$0xff]   ;;  %v648_v3 = vld [vmem:[#allocation5 + $0x10] sm:$0xff]   ;;  %vm369_vm0 = vcmask 523264   ;;  %s545_s21 = sshll.u32 %s1072_s29, 1 }
  0x85   : > { %827 = vsyncadd (%p1158_p6), [#allocation9], 4294967232  ;;  %373 = vmatprep.subr.bf16.mxu0 %v854_v0  ;;  %v649_v4 = vld [vmem:[#allocation5 + $0x18] sm:$0xff]   ;;  %v650_v7 = vld [vmem:[#allocation5 + $0x20] sm:$0xff]   ;;  %s562_s23 = sshll.u32 %s902_s19, 5  ;;  %s253_s27 = scalar_lea.vmem [#allocation10], %s545_s21 }
  0x86   : > { %374 = vmatpush1.bf16.msra.mxu0 %v646_v1  ;;  %v547_v5 = vld.sshfl [vmem:[%s217_s9] sm:$0x33 pattern:$0x76325410]  ;;  %v651_v8 = vld [vmem:[#allocation5 + $0x28] sm:$0xff]   ;;  %v652_v9 = vld [vmem:[#allocation5 + $0x30] sm:$0xff]   ;;  %s1093_s11 = scalar_lea.hbm %s1141_s4, %s562_s23 }
  0x87   : > { %375 = vmatprep.subr.bf16.mxu0 %v854_v0  ;;  %v295_v6 = vcombine.high %v547_v5, %v547_v5  ;;  %v653_v10 = vld [vmem:[#allocation5 + $0x38] sm:$0xff]   ;;  %v654_v11 = vld [vmem:[#allocation5 + $0x40] sm:$0xff]   ;;  %v655_v12 = vld [vmem:[#allocation5 + $0x48] sm:$0xff]   ;;  %s432_s5 = sshll.u32 %s253_s27, 4  ;;  %vm416_vm1 = vcmask 254976   ;;  %s419_s26 = scalar_lea.sflag [#allocation4], %s1072_s29  ;;  %s1095_s5 = int_to_ptr.vmem [resolvable:$true] %s432_s5 }
  0x88   : > { %v656_v13 = vld [vmem:[#allocation5 + $0x50] sm:$0xff]   ;;  %v657_v14 = vld [vmem:[#allocation5 + $0x58] sm:$0xff]   ;;  %v546_v15 = vld [vmem:[#allocation7] ss:$0 sm:$0xff]  ;;  %s772_s14 = scalar_lea.vmem %s1095_s5, 32  ;;  %s855_s19 = smov [#allocation10]  }
  0x89   : > { %560 = vmatprep.mubr.msk.bf16.mxu0 %vm369_vm0, %v295_v6  ;;  %v413_v17 = vld [vmem:[#allocation8] sm:$0xf]  ;;  %p773_p10 = scmp.ne.s32.totalorder %s1095_s5, %s772_s14  ;;  %s776_s13 = sshll.u32 %s855_s19, 4  ;;  %s777_s13 = int_to_ptr.vmem [resolvable:$false] %s776_s13 }
  0x8a   : > { %376 = vmatpush1.bf16.msra.mxu0 %v647_v2  ;;  %s778_s30 = scalar_lea.vmem %s777_s13, 64  ;;  %p779_p12 = scmp.lt.s32.totalorder %s1095_s5, %s777_s13 }
  0x8b   : > { %377 = vmatprep.subr.bf16.mxu0 %v854_v0  ;;  %p774_p3 = pnand %p773_p10, %p1027_p5  ;;  %p780_p2 = scmp.lt.s32.totalorder %s778_s30, %s772_s14 }
  0x8d   : > { %p775_p7 = pneg %p774_p3  ;;  %p781_p1 = por %p780_p2, %p779_p12 }
  0x8e   : > { %378 = vmatpush1.bf16.msra.mxu0 %v648_v3 }
  0x8f   : > { %379 = vmatprep.subr.bf16.mxu0 %v854_v0  ;;  %p782_p4 = pnand %p781_p1, %p775_p7 }
  0x92   : > { %380 = vmatpush1.bf16.msra.mxu0 %v649_v4 }
  0x93   : > { %381 = vmatprep.subr.bf16.mxu0 %v854_v0 }
  0x96   : > { %382 = vmatpush1.bf16.msra.mxu0 %v650_v7 }
  0x97   : > { %383 = vmatprep.subr.bf16.mxu0 %v854_v0 }
  0x9a   : > { %384 = vmatpush1.bf16.msra.mxu0 %v651_v8 }
  0x9b   : > { %385 = vmatprep.subr.bf16.mxu0 %v854_v0 }
  0x9e   : > { %386 = vmatpush1.bf16.msra.mxu0 %v652_v9 }
  0x9f   : > { %387 = vmatprep.subr.bf16.mxu0 %v854_v0 }
  0xa2   : > { %388 = vmatpush1.bf16.msra.mxu0 %v653_v10 }
  0xa3   : > { %389 = vmatprep.subr.bf16.mxu0 %v854_v0 }
  0xa6   : > { %390 = vmatpush1.bf16.msra.mxu0 %v654_v11 }
  0xa7   : > { %391 = vmatprep.subr.bf16.mxu0 %v854_v0 }
  0xaa   : > { %392 = vmatpush1.bf16.msra.mxu0 %v655_v12 }
  0xab   : > { %393 = vmatprep.subr.bf16.mxu0 %v854_v0 }
  0xae   : > { %394 = vmatpush1.bf16.msra.mxu0 %v656_v13 }
  0xaf   : > { %395 = vmatprep.subr.bf16.mxu0 %v854_v0 }
  0xb2   : > { %396 = vmatpush1.bf16.msra.mxu0 %v657_v14 }
  0xb5   : > { %406 = vmatmul.mubr.bf16.vlgmr.msra.gmra.mrb[0].mxu0 %v547_v5 }
 0x188   : > { %v407_v16 = vpop.f32.mrb[0].mxu0 }
 0x189   : > { %v408_v18 = vadd.f32 %v546_v15, %v407_v16  ;;  %v409_v19 = vpop.f32.mrb[1].mxu0 }
 0x18a   : > { %v410_v20 = vpop.f32.mrb[2].mxu0 }
 0x18b   : > { %v414_v21 = vadd.f32 %v413_v17, %v408_v18  ;;  %v411_v22 = vpop.f32.mrb[3].mxu0 }
 0x18d   : > { %v415_v23 = vpack.c.bf16 %v414_v21, %v414_v21 }
 0x18f   : > { %417 = vst.msk [vmem:[%s253_s27] sm:$0x3] %vm416_vm1, %v415_v23 }
 0x190   : > { %785 = shalt.err (!%p782_p4)
}
 0x191   : > { %s786_s20 = scalar_lea.hbm %s1093_s11, 32  ;;  %s790_s8 = scalar_lea.hbm %s1141_s4, 64 }
 0x192   : > { %p787_p0 = scmp.ne.s32.totalorder %s1093_s11, %s786_s20  ;;  %p791_p11 = scmp.lt.u32.totalorder %s1093_s11, %s1141_s4 }
 0x193   : > { %p792_p13 = scmp.lt.u32.totalorder %s790_s8, %s786_s20  ;;  %p794_p10 = scmp.lt.u32.totalorder %s786_s20, %s1093_s11 }
 0x194   : > { %p788_p9 = pnand %p787_p0, %p1027_p5 }
 0x195   : > { %p793_p6 = por %p792_p13, %p791_p11 }
 0x196   : > { %p789_p8 = pneg %p788_p9 }
 0x197   : > { %p795_p3 = por %p794_p10, %p793_p6 }
 0x199   : > { %p796_p7 = pnand %p795_p3, %p789_p8 }
 0x19b   : > { %799 = shalt.err (!%p796_p7)
}
 0x19c   : > { %580 = dma.vmem_to_hbm [thread:$0]  (%p1027_p5), %s1095_s5, 32, %s1093_s11, %s419_s26  }
 0x19d PF: > { %s444_s21 = sand.u32 1, %s834_s15   ;;  %p1159_p12 = scmp.ne.s32.totalorder %s1146_s22, 0 }
 0x19e   : > { %p1160_p2 = scmp.ge.s32.totalorder %s846_s18, 2  ;;  %s445_s23 = scalar_lea.sflag [#allocation4], %s444_s21 }
 0x1a0   : > { %p597_p1 = pnand %p1160_p2, %p1159_p12 }
 0x1a2   : > { %829 = dma.done.wait (!%p597_p1), %s445_s23, 32  }
 0x1a3   : > { %831 = vsyncadd (!%p597_p1), %s445_s23, 4294967264  ;;  %p19_p4 = scmp.ge.s32.totalorder %s1013_s10, 4   ;;  %s1161_s15 = smov %s838_s16 }
 0x1a4   : > { %s1162_s16 = smov %s842_s17  ;;  %s1163_s17 = smov %s1023_s25 }
 0x1a5   : > { %s1164_s18 = smov %s1013_s10  ;;  %21 = sbr.rel (!%p19_p4) target bundleno = 7 (0x7), region = 93 }
 0x1ac   :  { %450 = vsyncpa [#allocation3], 1 }
 0x1ad   :  { %452 = vsyncpa [#allocation3 + $0x1], 1 }
 0x1ae   :  { %453 = vsyncpa [#allocation6], 1 }
 0x1af   :  { %454 = vsyncpa [#allocation9], 1 }
 0x1b0   :  { %455 = vsyncpa [#allocation4], 1 }
 0x1b1   :  { %457 = vsyncpa [#allocation4 + $0x1], 1 }

</bundles_post_ra>
